<compile_context>
chip_gen: v7x
topology: tpu7x:2x2x1
jax: 0.10.0
libtpu: 0.0.40
codegen_flags: <defaults>
</compile_context>

<pallas_src>
import functools

import jax
import jax.numpy as jnp
from jax.experimental import pallas as pl
from jax.experimental.pallas import tpu as pltpu


def _round_up(x, m):
    return ((x + m - 1) // m) * m


def _adloss_kernel(ins_ref, tgt_ref, out_ref, s1_ref, s2_ref, shift_ref, *,
                   batch, needs_mask):
    """Fused pass: accumulate sum(d) and sum(d^2) per column, finalize."""
    j = pl.program_id(1)                               # batch-reduction axis

    x = ins_ref[...].astype(jnp.float32)               # (tile_b, tile_d)
    t = tgt_ref[...].astype(jnp.float32)               # (tile_b, 1)
    raw = x - t                                        # lane-broadcast of t

    @pl.when(j == 0)
    def _():
        s1_ref[...] = jnp.zeros_like(s1_ref)
        s2_ref[...] = jnp.zeros_like(s2_ref)
        # Pairwise differences are invariant to any per-column shift; shifting
        # by the first row keeps 2B*S2 - 2*S1^2 well conditioned in f32.
        shift_ref[...] = raw[0:1, :]

    d = raw - shift_ref[...]                           # (tile_b, tile_d)

    if needs_mask:
        # Ragged last batch tile: zero out garbage rows (global row >= B).
        tile_b = d.shape[0]
        row = jax.lax.broadcasted_iota(jnp.int32, (tile_b, 1), 0) + j * tile_b
        d = jnp.where(row < batch, d, 0.0)

    s1_ref[...] += jnp.sum(d, axis=0, keepdims=True)       # (1, tile_d)
    s2_ref[...] += jnp.sum(d * d, axis=0, keepdims=True)   # (1, tile_d)

    @pl.when(j == pl.num_programs(1) - 1)
    def _():
        B = jnp.float32(batch)
        s1 = s1_ref[...]
        s2 = s2_ref[...]
        out_ref[...] = ((2.0 * B * s2 - 2.0 * s1 * s1)
                        / (B * (B - 1.0))).astype(out_ref.dtype)


def ad_loss(ins, target, *, max_tile_d=2048,
            target_block_bytes=4 * 1024 * 1024):
    """Pallas TPU implementation of ADLoss.forward; returns shape ins.shape[1:]."""
    B = ins.shape[0]
    if B < 2:
        raise ValueError("ADLoss requires batch >= 2 (divides by B*(B-1)).")

    out_trailing = ins.shape[1:]
    ins2 = ins.reshape(B, -1)                  # free reshape, no transpose / copy
    D = ins2.shape[1]
    tgt = target.reshape(B, 1)

    itemsize = jnp.dtype(ins2.dtype).itemsize
    sublane = {4: 8, 2: 16, 1: 32}.get(itemsize, 8)   # dtype-aware packing

    # ---- column (lane) tile -------------------------------------------------
    if D <= 128:
        tile_d = D                              # full-dim block, no lane padding
    else:
        tile_d = min(max_tile_d, _round_up(D, 128))
        # Keep >= 2 column tiles so the "parallel" axis feeds both v7x cores.
        if pl.cdiv(D, tile_d) == 1 and tile_d > 128:
            tile_d = max(128, _round_up(pl.cdiv(D, 2), 128))

    # ---- batch (sublane) tile: size by byte budget (~4 MiB per ins block) ----
    tile_b = max(sublane,
                 (target_block_bytes // (tile_d * itemsize)) // sublane * sublane)
    tile_b = min(tile_b, _round_up(B, sublane))

    grid = (pl.cdiv(D, tile_d), pl.cdiv(B, tile_b))   # (parallel cols, batch reduce)
    needs_mask = (B % tile_b) != 0

    out = pl.pallas_call(
        functools.partial(_adloss_kernel, batch=B, needs_mask=needs_mask),
        out_shape=jax.ShapeDtypeStruct((1, D), jnp.float32),
        grid_spec=pltpu.PrefetchScalarGridSpec(
            num_scalar_prefetch=0,
            grid=grid,
            in_specs=[
                pl.BlockSpec((tile_b, tile_d), lambda i, j: (j, i)),
                pl.BlockSpec((tile_b, 1), lambda i, j: (j, 0)),
            ],
            out_specs=pl.BlockSpec((1, tile_d), lambda i, j: (0, i)),
            scratch_shapes=[pltpu.VMEM((1, tile_d), jnp.float32),   # sum(d)
                            pltpu.VMEM((1, tile_d), jnp.float32),   # sum(d^2)
                            pltpu.VMEM((1, tile_d), jnp.float32)],  # column shift
        ),
        compiler_params=pltpu.CompilerParams(
            dimension_semantics=("parallel", "arbitrary")),
    )(ins2, tgt)

    return out.reshape(out_trailing)


def _reference(ins, target):
    """Pure-JAX brute-force O(B^2) version mirroring the PyTorch double loop."""
    B = ins.shape[0]
    ins2 = ins.reshape(B, -1).astype(jnp.float32)
    t = target.reshape(B, 1).astype(jnp.float32)
    diff = ins2 - t
    pd = diff[:, None, :] - diff[None, :, :]
    res = jnp.sum(pd * pd, axis=(0, 1))        # i == j terms are exactly 0
    return (res / (B * (B - 1))).reshape(ins.shape[1:])


if __name__ == "__main__":
    key = jax.random.PRNGKey(0)

    cases = [
        ((8, 32), jnp.float32),       # aligned batch, narrow D (full-dim lane block)
        ((10, 2, 20), jnp.float32),   # ragged batch tile (mask path), multi-dim trailing
        ((12, 130), jnp.float32),     # D > 128: two column tiles, ragged lane edge
    ]

    for shape, dtype in cases:
        key, k_ins, k_tgt = jax.random.split(key, 3)
        ins = jax.random.normal(k_ins, shape, dtype=dtype)
        # Constant target offset exercises the conditioning shift (cancels in the loss).
        target = jax.random.normal(k_tgt, (shape[0],), dtype=dtype) + 3.0

        out = jax.block_until_ready(ad_loss(ins, target))
        ref = _reference(ins, target)
        assert out.shape == ref.shape, (out.shape, ref.shape)
        assert jnp.allclose(out, ref, rtol=1e-4, atol=1e-4), (shape, out, ref)

    print("KERNEL_OK")
</pallas_src>

<mosaic_0001>
module attributes {stable_mosaic.version = 11 : i64} {
  func.func @_adloss_kernel(%arg0: i32, %arg1: i32, %arg2: memref<8x32xf32, #tpu.memory_space<vmem>>, %arg3: memref<8x1xf32, #tpu.memory_space<vmem>>, %arg4: memref<1x32xf32, #tpu.memory_space<vmem>>, %arg5: memref<1x32xf32, #tpu.memory_space<vmem>>, %arg6: memref<1x32xf32, #tpu.memory_space<vmem>>, %arg7: memref<1x32xf32, #tpu.memory_space<vmem>>) attributes {dimension_semantics = [#tpu.dimension_semantics<parallel>, #tpu.dimension_semantics<arbitrary>], iteration_bounds = array<i64: 1, 1>, scalar_prefetch = 0 : i64, scratch_operands = 3 : i64, tpu.core_type = #tpu.core_type<tc>, window_params = [{transform_indices = @transform_0, window_bounds = array<i64: 8, 32>}, {transform_indices = @transform_1, window_bounds = array<i64: 8, 1>}, {transform_indices = @transform_2, window_bounds = array<i64: 1, 32>}]} {
    %c0 = arith.constant 0 : index
    %c0_0 = arith.constant 0 : index
    %0 = vector.load %arg2[%c0, %c0_0] : memref<8x32xf32, #tpu.memory_space<vmem>>, vector<8x32xf32>
    %c0_1 = arith.constant 0 : index
    %c0_2 = arith.constant 0 : index
    %1 = vector.load %arg3[%c0_1, %c0_2] : memref<8x1xf32, #tpu.memory_space<vmem>>, vector<8x1xf32>
    %2 = vector.broadcast %1 : vector<8x1xf32> to vector<8x32xf32>
    %3 = arith.subf %0, %2 : vector<8x32xf32>
    %c0_i32 = arith.constant 0 : i32
    %4 = arith.cmpi eq, %arg1, %c0_i32 : i32
    %5 = arith.extui %4 : i1 to i32
    %c0_i32_3 = arith.constant 0 : i32
    %6 = arith.cmpi ne, %5, %c0_i32_3 : i32
    scf.if %6 {
      %cst_17 = arith.constant 0.000000e+00 : f32
      %24 = vector.broadcast %cst_17 : f32 to vector<1x32xf32>
      %c0_18 = arith.constant 0 : index
      %c0_19 = arith.constant 0 : index
      %25 = vector.load %arg5[%c0_18, %c0_19] : memref<1x32xf32, #tpu.memory_space<vmem>>, vector<1x32xf32>
      tpu.vector_store %arg5[%c0_18, %c0_19], %24 {strides = array<i32>} : memref<1x32xf32, #tpu.memory_space<vmem>>, vector<1x32xf32>,
      %cst_20 = arith.constant 0.000000e+00 : f32
      %26 = vector.broadcast %cst_20 : f32 to vector<1x32xf32>
      %c0_21 = arith.constant 0 : index
      %c0_22 = arith.constant 0 : index
      %27 = vector.load %arg6[%c0_21, %c0_22] : memref<1x32xf32, #tpu.memory_space<vmem>>, vector<1x32xf32>
      tpu.vector_store %arg6[%c0_21, %c0_22], %26 {strides = array<i32>} : memref<1x32xf32, #tpu.memory_space<vmem>>, vector<1x32xf32>,
      %28 = vector.extract_strided_slice %3 {offsets = [0, 0], sizes = [1, 32], strides = [1, 1]} : vector<8x32xf32> to vector<1x32xf32>
      %c0_23 = arith.constant 0 : index
      %c0_24 = arith.constant 0 : index
      %29 = vector.load %arg7[%c0_23, %c0_24] : memref<1x32xf32, #tpu.memory_space<vmem>>, vector<1x32xf32>
      tpu.vector_store %arg7[%c0_23, %c0_24], %28 {strides = array<i32>} : memref<1x32xf32, #tpu.memory_space<vmem>>, vector<1x32xf32>,
    } else {
    }
    %c0_4 = arith.constant 0 : index
    %c0_5 = arith.constant 0 : index
    %7 = vector.load %arg7[%c0_4, %c0_5] : memref<1x32xf32, #tpu.memory_space<vmem>>, vector<1x32xf32>
    %8 = vector.broadcast %7 : vector<1x32xf32> to vector<8x32xf32>
    %9 = arith.subf %3, %8 : vector<8x32xf32>
    %c0_6 = arith.constant 0 : index
    %c0_7 = arith.constant 0 : index
    %10 = vector.load %arg5[%c0_6, %c0_7] : memref<1x32xf32, #tpu.memory_space<vmem>>, vector<1x32xf32>
    %cst = arith.constant dense<0.000000e+00> : vector<32xf32>
    %11 = vector.multi_reduction <add>, %9, %cst [0] : vector<8x32xf32> to vector<32xf32>
    %12 = vector.shape_cast %11 : vector<32xf32> to vector<1x32xf32>
    %13 = arith.addf %10, %12 : vector<1x32xf32>
    %c0_8 = arith.constant 0 : index
    %c0_9 = arith.constant 0 : index
    %14 = vector.load %arg5[%c0_8, %c0_9] : memref<1x32xf32, #tpu.memory_space<vmem>>, vector<1x32xf32>
    tpu.vector_store %arg5[%c0_8, %c0_9], %13 {strides = array<i32>} : memref<1x32xf32, #tpu.memory_space<vmem>>, vector<1x32xf32>,
    %c0_10 = arith.constant 0 : index
    %c0_11 = arith.constant 0 : index
    %15 = vector.load %arg6[%c0_10, %c0_11] : memref<1x32xf32, #tpu.memory_space<vmem>>, vector<1x32xf32>
    %16 = arith.mulf %9, %9 : vector<8x32xf32>
    %cst_12 = arith.constant dense<0.000000e+00> : vector<32xf32>
    %17 = vector.multi_reduction <add>, %16, %cst_12 [0] : vector<8x32xf32> to vector<32xf32>
    %18 = vector.shape_cast %17 : vector<32xf32> to vector<1x32xf32>
    %19 = arith.addf %15, %18 : vector<1x32xf32>
    %c0_13 = arith.constant 0 : index
    %c0_14 = arith.constant 0 : index
    %20 = vector.load %arg6[%c0_13, %c0_14] : memref<1x32xf32, #tpu.memory_space<vmem>>, vector<1x32xf32>
    tpu.vector_store %arg6[%c0_13, %c0_14], %19 {strides = array<i32>} : memref<1x32xf32, #tpu.memory_space<vmem>>, vector<1x32xf32>,
    %c0_i32_15 = arith.constant 0 : i32
    %21 = arith.cmpi eq, %arg1, %c0_i32_15 : i32
    %22 = arith.extui %21 : i1 to i32
    %c0_i32_16 = arith.constant 0 : i32
    %23 = arith.cmpi ne, %22, %c0_i32_16 : i32
    scf.if %23 {
      %c0_17 = arith.constant 0 : index
      %c0_18 = arith.constant 0 : index
      %24 = vector.load %arg5[%c0_17, %c0_18] : memref<1x32xf32, #tpu.memory_space<vmem>>, vector<1x32xf32>
      %c0_19 = arith.constant 0 : index
      %c0_20 = arith.constant 0 : index
      %25 = vector.load %arg6[%c0_19, %c0_20] : memref<1x32xf32, #tpu.memory_space<vmem>>, vector<1x32xf32>
      %cst_21 = arith.constant 2.000000e+00 : f32
      %cst_22 = arith.constant 8.000000e+00 : f32
      %26 = arith.mulf %cst_21, %cst_22 : f32
      %27 = vector.broadcast %26 : f32 to vector<1x32xf32>
      %28 = arith.mulf %27, %25 : vector<1x32xf32>
      %cst_23 = arith.constant 2.000000e+00 : f32
      %29 = vector.broadcast %cst_23 : f32 to vector<1x32xf32>
      %30 = arith.mulf %29, %24 : vector<1x32xf32>
      %31 = arith.mulf %30, %24 : vector<1x32xf32>
      %32 = arith.subf %28, %31 : vector<1x32xf32>
      %cst_24 = arith.constant 8.000000e+00 : f32
      %cst_25 = arith.constant 1.000000e+00 : f32
      %33 = arith.subf %cst_24, %cst_25 : f32
      %cst_26 = arith.constant 8.000000e+00 : f32
      %34 = arith.mulf %cst_26, %33 : f32
      %35 = vector.broadcast %34 : f32 to vector<1x32xf32>
      %36 = arith.divf %32, %35 : vector<1x32xf32>
      %c0_27 = arith.constant 0 : index
      %c0_28 = arith.constant 0 : index
      %37 = vector.load %arg4[%c0_27, %c0_28] : memref<1x32xf32, #tpu.memory_space<vmem>>, vector<1x32xf32>
      tpu.vector_store %arg4[%c0_27, %c0_28], %36 {strides = array<i32>} : memref<1x32xf32, #tpu.memory_space<vmem>>, vector<1x32xf32>,
    } else {
    }
    return
  }
  func.func @transform_0(%arg0: i32, %arg1: i32) -> (i32, i32) {
    %c0_i32 = arith.constant 0 : i32
    return %arg1, %arg0 : i32, i32
  }
  func.func @transform_1(%arg0: i32, %arg1: i32) -> (i32, i32) {
    %c0_i32 = arith.constant 0 : i32
    %c0_i32_0 = arith.constant 0 : i32
    return %arg1, %c0_i32 : i32, i32
  }
  func.func @transform_2(%arg0: i32, %arg1: i32) -> (i32, i32) {
    %c0_i32 = arith.constant 0 : i32
    %c0_i32_0 = arith.constant 0 : i32
    return %c0_i32, %arg0 : i32, i32
  }
}

</mosaic_0001>

<bundles_post_ra>
// kernel: tpu_custom_call.1
= control target key start
LH: loop header
LB: loop body
LE: loop exit
PB: predicated region body
PF: predicated region fallthrough
CT: control target
= control target key end

     0   :  { %vm24_vm0 = vcmask 253952   ;;  %v114_v1 = vmov 0   ;;  %v115_v2 = vmov 0.0   ;;  %s156_s0 = inlined_call_operand.vmem [shape: f32[8,32], index: 0, kind: input, shape index: {}]   ;;  %s157_s1 = inlined_call_operand.vmem [shape: f32[8,1], index: 1, kind: input, shape index: {}]   ;;  %s158_s2 = inlined_call_operand.hbm [shape: f32[1,32], index: 2, kind: output, shape index: {}]  }
   0x1   :  { %v13_v0 = vld [vmem:[%s157_s1] sm:$0xff]  ;;  %89 = vset.pattern.permute.xlu0 %v114_v1  ;;  %25 = vst.msk [vmem:[#allocation2] sm:$0x1] %vm24_vm0, %v115_v2  ;;  %26 = vst.msk [vmem:[#allocation3] sm:$0x1] %vm24_vm0, %v115_v2 }
   0x2   :  { %7 = vsyncpa [#allocation6], 0  ;;  %16 = vperm.xlu0 %89, %v13_v0   ;;  %v12_v3 = vld [vmem:[%s156_s0] sm:$0xff]  ;;  %vm37_vm1 = vcmask 261120   ;;  %s116_s0 = smov [#allocation5]  }
   0x3   :  { %s77_s1 = sshll.u32 %s116_s0, 4  ;;  %s78_s1 = int_to_ptr.vmem [resolvable:$true] %s77_s1 }
   0x4   :  { %s90_s13 = scalar_lea.vmem %s78_s1, 16  ;;  %s94_s14 = scalar_lea.vmem %s78_s1, 32 }
   0x5   :  { %p91_p0 = scmp.ne.s32.totalorder %s78_s1, %s90_s13  ;;  %p95_p1 = scmp.lt.s32.totalorder %s78_s1, %s78_s1 }
   0x6   :  { %p96_p2 = scmp.lt.s32.totalorder %s94_s14, %s90_s13 }
   0x8   :  { %v36_v20 = vld [vmem:[#allocation2] sm:$0x1]  ;;  %v48_v23 = vld [vmem:[#allocation3] sm:$0x1]  ;;  %p97_p3 = por %p96_p2, %p95_p1 }
   0xa   :  { %p98_p4 = pnand %p97_p3, %p91_p0 }
  0x81   :  { %v17_v4 = vpop.permute.xlu0 %16 }
  0x82   :  { %v19_v5 = vsub.f32 %v12_v3, %v17_v4 }
  0x84   :  { %27 = vst.msk [vmem:[#allocation4] sm:$0x1] %vm24_vm0, %v19_v5 }
  0x8b   :  { %v85_v6 = vld [vmem:[#allocation4] ss:$0 sm:$0xff] }
  0x8c   :  { %v35_v7 = vsub.f32 %v19_v5, %v85_v6 }
  0x8e   :  { %v38_v8 = vsel %vm37_vm1, %v35_v7, 0.0  ;;  %v49_v9 = vmul.f32 %v35_v7, %v35_v7 }
  0x8f   :  { %v39_v10 = vrot.slane %v38_v8, 4 }
  0x90   :  { %v50_v11 = vsel %vm37_vm1, %v49_v9, 0.0 }
  0x91   :  { %v40_v12 = vadd.f32 %v39_v10, %v38_v8  ;;  %v51_v13 = vrot.slane %v50_v11, 4 }
  0x93   :  { %v41_v14 = vrot.slane %v40_v12, 2  ;;  %v52_v15 = vadd.f32 %v51_v13, %v50_v11 }
  0x95   :  { %v42_v16 = vadd.f32 %v41_v14, %v40_v12  ;;  %v53_v17 = vrot.slane %v52_v15, 2 }
  0x97   :  { %v43_v18 = vrot.slane %v42_v16, 1  ;;  %v54_v19 = vadd.f32 %v53_v17, %v52_v15 }
  0x99   :  { %v44_v21 = vadd.f32 %v43_v18, %v42_v16  ;;  %v55_v22 = vrot.slane %v54_v19, 1 }
  0x9b   :  { %v45_v24 = vadd.f32 %v44_v21, %v36_v20  ;;  %v56_v25 = vadd.f32 %v55_v22, %v54_v19 }
  0x9d   :  { %47 = vst.msk [vmem:[#allocation2] sm:$0x1] %vm24_vm0, %v45_v24  ;;  %v57_v26 = vadd.f32 %v56_v25, %v48_v23 }
  0x9f   :  { %58 = vst.msk [vmem:[#allocation3] sm:$0x1] %vm24_vm0, %v57_v26 }
  0xa4   :  { %v62_v27 = vld [vmem:[#allocation2] sm:$0x1] }
  0xa5   :  { %v65_v28 = vmul.f32 2.0, %v62_v27 }
  0xa6   :  { %v63_v29 = vld [vmem:[#allocation3] sm:$0x1] }
  0xa7   :  { %v64_v30 = vmul.f32 16.0, %v63_v29  ;;  %v66_v31 = vmul.f32 %v65_v28, %v62_v27 }
  0xa9   :  { %v67_v32 = vsub.f32 %v64_v30, %v66_v31 }
  0xab   :  { %v69_v33 = vmul.f32 0.017857144, %v67_v32 }
  0xad   :  { %70 = vst.msk [vmem:[#allocation5] sm:$0x1] %vm24_vm0, %v69_v33 }
  0xae   :  { %101 = shalt.err (!%p98_p4)
}
  0xaf   :  { %s102_s17 = scalar_lea.hbm %s158_s2, 16 }
  0xb0   :  { %p103_p5 = scmp.ne.s32.totalorder %s158_s2, %s102_s17  ;;  %p106_p6 = scmp.lt.u32.totalorder %s102_s17, %s158_s2 }
  0xb2   :  { %p108_p7 = pnand %p106_p6, %p103_p5 }
  0xb4   :  { %111 = shalt.err (!%p108_p7)
}
  0xb5   :  { %80 = dma.vmem_to_hbm [thread:$0]  %s78_s1, 16, %s158_s2, [#allocation6]  }
  0xb6   :  { %112 = dma.done.wait [#allocation6], 16  }
  0xb7   :  { %113 = vsyncadd [#allocation6], 4294967280 }
  0xb8   :  { %84 = vsyncpa [#allocation6], 1 }

</bundles_post_ra>
